<compile_context>
chip_gen: v5e
topology: v5e:2x2
jax: 0.10.0
libtpu: 0.0.40
codegen_flags: <defaults>
</compile_context>

<pallas_src>
import functools

import jax
import jax.numpy as jnp
from jax.experimental import pallas as pl
from jax.experimental.pallas import tpu as pltpu


def _context_block_kernel(x_ref, wm_ref, bm_ref, w1t_ref, b1_ref, g_ref, be_ref,
                          w2t_ref, b2_ref, out_ref):
    """One (Bt, C, HW) batch-chunk per grid step.

    x_ref   : (Bt, C, HW)  input features (flattened spatial), native dtype
    wm_ref  : (1, C)       conv_mask 1x1 weight       bm_ref : (1, 1) its bias (SMEM)
    w1t_ref : (C, P)       bottleneck conv1 weight^T  b1_ref : (1, P) its bias
    g_ref   : (1, P)       LayerNorm gamma            be_ref : (1, P) LayerNorm beta
    w2t_ref : (P, C)       bottleneck conv2 weight^T  b2_ref : (1, C) its bias
    out_ref : (Bt, C, HW)
    """
    x = x_ref[...]                                               # native dtype
    bt, c, hw = x.shape
    cdt = x.dtype

    # --- spatial_pool (attention pooling) -----------------------------------
    # conv_mask: 1x1 conv C -> 1.  Batched MXU matmul: (Bt,1,C) @ (Bt,C,HW).
    wm_b = jnp.broadcast_to(wm_ref[...].astype(cdt).reshape(1, 1, c), (bt, 1, c))
    logits = jnp.einsum('boc,bcs->bos', wm_b, x,
                        preferred_element_type=jnp.float32)      # (Bt, 1, HW) f32
    logits = logits + bm_ref[0, 0]                               # SMEM scalar bias

    m = jnp.max(logits, axis=-1, keepdims=True)
    e = jnp.exp(logits - m)
    denom = jnp.sum(e, axis=-1, keepdims=True)
    p = e * pl.reciprocal(denom, approx=True)                    # softmax over HW

    # context[b, c] = sum_s p[b, s] * x[b, c, s]  (MXU, contraction on lanes)
    ctx = jnp.einsum('bos,bcs->boc', p.astype(cdt), x,
                     preferred_element_type=jnp.float32)         # (Bt, 1, C) f32
    context = ctx.reshape(bt, c)                                 # lane-major (Bt, C)

    # --- channel_add_conv: 1x1 conv -> LayerNorm([P,1,1]) -> ReLU -> 1x1 conv
    z = jnp.dot(context, w1t_ref[...],
                preferred_element_type=jnp.float32) + b1_ref[...]    # (Bt, P)
    mu = jnp.mean(z, axis=-1, keepdims=True)
    var = jnp.mean((z - mu) ** 2, axis=-1, keepdims=True)
    zn = (z - mu) * jax.lax.rsqrt(var + 1e-5)
    zn = zn * g_ref[...] + be_ref[...]
    zn = jnp.maximum(zn, 0.0)                                        # ReLU
    term = jnp.dot(zn, w2t_ref[...],
                   preferred_element_type=jnp.float32) + b2_ref[...]  # (Bt, C) f32

    # --- fusion: channel-wise addition, broadcast over spatial (native dtype)
    out_ref[...] = x + term.astype(cdt)[:, :, None]


def context_block(x, params, *, target_block_bytes=8 << 20):
    """x: (B, C, H, W) NCHW; returns (B, C, H, W). Works for f32 or bf16 x."""
    B, C, H, W = x.shape
    HW = H * W
    wm, bm, w1, b1, g, be, w2, b2 = params
    P = w1.shape[0]

    # Lane-major parameter layout (row vectors / transposed 1x1-conv weights).
    wmr = jnp.reshape(wm, (1, C)).astype(jnp.float32)
    bmr = jnp.reshape(bm, (1, 1)).astype(jnp.float32)
    w1t = jnp.reshape(w1, (P, C)).astype(jnp.float32).T          # (C, P)
    b1r = jnp.reshape(b1, (1, P)).astype(jnp.float32)
    gr = jnp.reshape(g, (1, P)).astype(jnp.float32)
    ber = jnp.reshape(be, (1, P)).astype(jnp.float32)
    w2t = jnp.reshape(w2, (C, P)).astype(jnp.float32).T          # (P, C)
    b2r = jnp.reshape(b2, (1, C)).astype(jnp.float32)

    x2 = x.reshape(B, C, HW)        # no spatial padding, no batch padding

    # Batch tile sized in the *input* dtype; snap down to a divisor of B so the
    # last block is never partial and no pad/slice HBM passes are needed.
    itemsize = jnp.dtype(x.dtype).itemsize
    per_b = C * HW * itemsize
    bt_target = int(max(1, min(B, target_block_bytes // per_b)))
    if B >= 2:
        bt_target = min(bt_target, max(1, B // 2))   # >=2 grid steps (v7x: 2 TCs)
    Bt = max(d for d in range(1, bt_target + 1) if B % d == 0)

    # VMEM budget: 2x in + 2x out blocks (pipeline) + f32 pooling temps + margin.
    # TODO(synk): for single-image slabs too large for VMEM (huge C*HW, e.g. on
    # v7x's 64 MiB), restructure into an HW-tiled two-pass online-softmax pool.
    block_bytes = Bt * per_b
    f32_temps = 3 * Bt * HW * 4 + 4 * Bt * max(C, P) * 4
    vmem_limit = int(min(100 << 20,
                         max(32 << 20, 4 * block_bytes + f32_temps + (4 << 20))))

    def const_spec(a):
        nd = a.ndim
        return pl.BlockSpec(a.shape, lambda i, _nd=nd: (0,) * _nd)

    out = pl.pallas_call(
        _context_block_kernel,
        out_shape=jax.ShapeDtypeStruct((B, C, HW), x.dtype),
        grid=(B // Bt,),
        in_specs=[
            pl.BlockSpec((Bt, C, HW), lambda i: (i, 0, 0)),
            const_spec(wmr),
            pl.BlockSpec(memory_space=pltpu.MemorySpace.SMEM),   # (1,1) scalar bias
            const_spec(w1t), const_spec(b1r), const_spec(gr), const_spec(ber),
            const_spec(w2t), const_spec(b2r),
        ],
        out_specs=pl.BlockSpec((Bt, C, HW), lambda i: (i, 0, 0)),
        compiler_params=pltpu.CompilerParams(
            dimension_semantics=("parallel",),
            vmem_limit_bytes=vmem_limit),
    )(x2, wmr, bmr, w1t, b1r, gr, ber, w2t, b2r)

    return out.reshape(B, C, H, W)


def context_block_ref(x, params):
    """Pure-JAX reference mirroring the PyTorch forward pass (f32)."""
    wm, bm, w1, b1, g, be, w2, b2 = params
    B, C, H, W = x.shape
    xf = x.astype(jnp.float32).reshape(B, C, H * W)
    logits = jnp.einsum('oc,bcs->bos', wm, xf) + bm[0, 0]          # (B, 1, HW)
    p = jax.nn.softmax(logits, axis=-1)
    context = jnp.einsum('bcs,bos->bc', xf, p)[..., None]          # (B, C, 1)
    z = jnp.einsum('pc,bcz->bpz', w1, context) + b1[None]          # (B, P, 1)
    mu = z.mean(axis=1, keepdims=True)
    var = ((z - mu) ** 2).mean(axis=1, keepdims=True)
    zn = (z - mu) / jnp.sqrt(var + 1e-5) * g[None] + be[None]
    zn = jnp.maximum(zn, 0.0)
    term = jnp.einsum('cp,bpz->bcz', w2, zn) + b2[None]            # (B, C, 1)
    return xf.reshape(B, C, H, W) + term[..., None]                # bcast over H, W


if __name__ == "__main__":
    B, C, H, W = 2, 16, 16, 16
    ratio = 0.5
    P = int(C * ratio)   # bottleneck planes

    key = jax.random.PRNGKey(0)
    ks = jax.random.split(key, 8)
    x = jax.random.normal(ks[0], (B, C, H, W), jnp.float32)

    # Deterministic parameter init (shapes follow the module's 1x1 convs /
    # LayerNorm).  NOTE: reset_parameters() zeroes the final conv, which makes
    # the fusion term identically zero; we use non-zero weights so the whole
    # compute path is exercised (forward semantics do not depend on init).
    wm = jax.random.normal(ks[1], (1, C), jnp.float32) * 0.1   # conv_mask weight
    bm = jnp.zeros((1, 1), jnp.float32)                        # conv_mask bias
    w1 = jax.random.normal(ks[2], (P, C), jnp.float32) * 0.1   # channel_add_conv[0].weight
    b1 = jax.random.normal(ks[3], (P, 1), jnp.float32) * 0.1   # channel_add_conv[0].bias
    g = jnp.ones((P, 1), jnp.float32)                          # LayerNorm weight
    be = jnp.zeros((P, 1), jnp.float32)                        # LayerNorm bias
    w2 = jax.random.normal(ks[4], (C, P), jnp.float32) * 0.1   # channel_add_conv[3].weight
    b2 = jax.random.normal(ks[5], (C, 1), jnp.float32) * 0.1   # channel_add_conv[3].bias
    params = (wm, bm, w1, b1, g, be, w2, b2)

    fn = jax.jit(context_block)

    # f32 path: tight check (tolerance covers the EUP approximate reciprocal
    # used for the softmax normalization).
    out = jax.block_until_ready(fn(x, params))
    ref = context_block_ref(x, params)
    assert out.shape == x.shape
    err = jnp.max(jnp.abs(out - ref))
    assert jnp.allclose(out, ref, atol=5e-3, rtol=5e-3), f"max abs diff {err}"

    # bf16 I/O path (halves HBM traffic; MXU accumulates in f32 inside the kernel).
    xb = x.astype(jnp.bfloat16)
    outb = jax.block_until_ready(fn(xb, params))
    assert outb.shape == x.shape and outb.dtype == jnp.bfloat16
    assert jnp.allclose(outb.astype(jnp.float32), ref, atol=1e-1, rtol=1e-1)

    print("KERNEL_OK")
</pallas_src>

<mosaic_0001>
module attributes {stable_mosaic.version = 11 : i64} {
  func.func @_context_block_kernel(%arg0: i32, %arg1: memref<1x16x256xf32, #tpu.memory_space<vmem>>, %arg2: memref<1x16xf32, #tpu.memory_space<vmem>>, %arg3: memref<1x1xf32, #tpu.memory_space<smem>>, %arg4: memref<16x8xf32, #tpu.memory_space<vmem>>, %arg5: memref<1x8xf32, #tpu.memory_space<vmem>>, %arg6: memref<1x8xf32, #tpu.memory_space<vmem>>, %arg7: memref<1x8xf32, #tpu.memory_space<vmem>>, %arg8: memref<8x16xf32, #tpu.memory_space<vmem>>, %arg9: memref<1x16xf32, #tpu.memory_space<vmem>>, %arg10: memref<1x16x256xf32, #tpu.memory_space<vmem>>) attributes {dimension_semantics = [#tpu.dimension_semantics<parallel>], iteration_bounds = array<i64: 2>, scalar_prefetch = 0 : i64, scratch_operands = 0 : i64, tpu.core_type = #tpu.core_type<tc>, window_params = [{transform_indices = @transform_0, window_bounds = array<i64: 1, 16, 256>}, {pipeline_mode = #tpu.pipeline_mode<synchronous>, transform_indices = @transform_1, window_bounds = array<i64: 1, 16>}, {transform_indices = @transform_2, window_bounds = array<i64: 1, 1>}, {pipeline_mode = #tpu.pipeline_mode<synchronous>, transform_indices = @transform_3, window_bounds = array<i64: 16, 8>}, {pipeline_mode = #tpu.pipeline_mode<synchronous>, transform_indices = @transform_4, window_bounds = array<i64: 1, 8>}, {pipeline_mode = #tpu.pipeline_mode<synchronous>, transform_indices = @transform_5, window_bounds = array<i64: 1, 8>}, {pipeline_mode = #tpu.pipeline_mode<synchronous>, transform_indices = @transform_6, window_bounds = array<i64: 1, 8>}, {pipeline_mode = #tpu.pipeline_mode<synchronous>, transform_indices = @transform_7, window_bounds = array<i64: 8, 16>}, {pipeline_mode = #tpu.pipeline_mode<synchronous>, transform_indices = @transform_8, window_bounds = array<i64: 1, 16>}, {transform_indices = @transform_9, window_bounds = array<i64: 1, 16, 256>}]} {
    %c0 = arith.constant 0 : index
    %c0_0 = arith.constant 0 : index
    %c0_1 = arith.constant 0 : index
    %0 = vector.load %arg1[%c0, %c0_0, %c0_1] : memref<1x16x256xf32, #tpu.memory_space<vmem>>, vector<1x16x256xf32>
    %c0_2 = arith.constant 0 : index
    %c0_3 = arith.constant 0 : index
    %1 = vector.load %arg2[%c0_2, %c0_3] : memref<1x16xf32, #tpu.memory_space<vmem>>, vector<1x16xf32>
    %2 = vector.shape_cast %1 : vector<1x16xf32> to vector<1x1x16xf32>
    "tpu.trace_start"() <{level = 10 : i32, message = "boc,bcs->bos"}> : () -> ()
    %cst = arith.constant dense<0.000000e+00> : vector<1x1x256xf32>
    %3 = tpu.matmul %2, %0, %cst {dimension_numbers = #tpu.dot_dimension_numbers<[2], [1], [1], [2], [0, 0, 0, 1, 1, 2], [0], [0]>} : vector<1x1x16xf32>, vector<1x16x256xf32>, vector<1x1x256xf32> -> vector<1x1x256xf32>
    "tpu.trace_stop"() : () -> ()
    %c0_4 = arith.constant 0 : index
    %c0_5 = arith.constant 0 : index
    %4 = memref.load %arg3[%c0_4, %c0_5] : memref<1x1xf32, #tpu.memory_space<smem>>
    %5 = vector.broadcast %4 : f32 to vector<1x1x256xf32>
    %6 = arith.addf %3, %5 : vector<1x1x256xf32>
    %cst_6 = arith.constant dense<0xFF800000> : vector<1x1xf32>
    %7 = vector.multi_reduction <maximumf>, %6, %cst_6 [2] : vector<1x1x256xf32> to vector<1x1xf32>
    %8 = vector.shape_cast %7 : vector<1x1xf32> to vector<1x1x1xf32>
    %9 = vector.broadcast %8 : vector<1x1x1xf32> to vector<1x1x256xf32>
    %10 = arith.subf %6, %9 : vector<1x1x256xf32>
    %11 = math.exp %10 : vector<1x1x256xf32>
    %cst_7 = arith.constant dense<0.000000e+00> : vector<1x1xf32>
    %12 = vector.multi_reduction <add>, %11, %cst_7 [2] : vector<1x1x256xf32> to vector<1x1xf32>
    %13 = vector.shape_cast %12 : vector<1x1xf32> to vector<1x1x1xf32>
    %14 = tpu.reciprocal %13 {approx = true} : vector<1x1x1xf32> -> vector<1x1x1xf32>
    %15 = vector.broadcast %14 : vector<1x1x1xf32> to vector<1x1x256xf32>
    %16 = arith.mulf %11, %15 : vector<1x1x256xf32>
    "tpu.trace_start"() <{level = 10 : i32, message = "bos,bcs->boc"}> : () -> ()
    %cst_8 = arith.constant dense<0.000000e+00> : vector<1x1x16xf32>
    %17 = tpu.matmul %16, %0, %cst_8 {dimension_numbers = #tpu.dot_dimension_numbers<[2], [2], [1], [1], [0, 0, 0, 1, 1, 1], [0], [0]>} : vector<1x1x256xf32>, vector<1x16x256xf32>, vector<1x1x16xf32> -> vector<1x1x16xf32>
    "tpu.trace_stop"() : () -> ()
    %18 = vector.shape_cast %17 : vector<1x1x16xf32> to vector<1x16xf32>
    %c0_9 = arith.constant 0 : index
    %c0_10 = arith.constant 0 : index
    %19 = vector.load %arg4[%c0_9, %c0_10] : memref<16x8xf32, #tpu.memory_space<vmem>>, vector<16x8xf32>
    %cst_11 = arith.constant dense<0.000000e+00> : vector<1x8xf32>
    %20 = tpu.matmul %18, %19, %cst_11 {dimension_numbers = #tpu.dot_dimension_numbers<[1], [0], [0], [1], [0, 0, 1, 1], [], []>} : vector<1x16xf32>, vector<16x8xf32>, vector<1x8xf32> -> vector<1x8xf32>
    %c0_12 = arith.constant 0 : index
    %c0_13 = arith.constant 0 : index
    %21 = vector.load %arg5[%c0_12, %c0_13] : memref<1x8xf32, #tpu.memory_space<vmem>>, vector<1x8xf32>
    %22 = arith.addf %20, %21 : vector<1x8xf32>
    %cst_14 = arith.constant dense<0.000000e+00> : vector<1xf32>
    %23 = vector.multi_reduction <add>, %22, %cst_14 [1] : vector<1x8xf32> to vector<1xf32>
    %24 = vector.shape_cast %23 : vector<1xf32> to vector<1x1xf32>
    %cst_15 = arith.constant 8.000000e+00 : f32
    %25 = vector.broadcast %cst_15 : f32 to vector<1x1xf32>
    %26 = arith.divf %24, %25 : vector<1x1xf32>
    %27 = vector.broadcast %26 : vector<1x1xf32> to vector<1x8xf32>
    %28 = arith.subf %22, %27 : vector<1x8xf32>
    %29 = arith.mulf %28, %28 : vector<1x8xf32>
    %cst_16 = arith.constant dense<0.000000e+00> : vector<1xf32>
    %30 = vector.multi_reduction <add>, %29, %cst_16 [1] : vector<1x8xf32> to vector<1xf32>
    %31 = vector.shape_cast %30 : vector<1xf32> to vector<1x1xf32>
    %cst_17 = arith.constant 8.000000e+00 : f32
    %32 = vector.broadcast %cst_17 : f32 to vector<1x1xf32>
    %33 = arith.divf %31, %32 : vector<1x1xf32>
    %34 = vector.broadcast %26 : vector<1x1xf32> to vector<1x8xf32>
    %35 = arith.subf %22, %34 : vector<1x8xf32>
    %cst_18 = arith.constant 9.99999974E-6 : f32
    %36 = vector.broadcast %cst_18 : f32 to vector<1x1xf32>
    %37 = arith.addf %33, %36 : vector<1x1xf32>
    %38 = math.rsqrt %37 : vector<1x1xf32>
    %39 = vector.broadcast %38 : vector<1x1xf32> to vector<1x8xf32>
    %40 = arith.mulf %35, %39 : vector<1x8xf32>
    %c0_19 = arith.constant 0 : index
    %c0_20 = arith.constant 0 : index
    %41 = vector.load %arg6[%c0_19, %c0_20] : memref<1x8xf32, #tpu.memory_space<vmem>>, vector<1x8xf32>
    %42 = arith.mulf %40, %41 : vector<1x8xf32>
    %c0_21 = arith.constant 0 : index
    %c0_22 = arith.constant 0 : index
    %43 = vector.load %arg7[%c0_21, %c0_22] : memref<1x8xf32, #tpu.memory_space<vmem>>, vector<1x8xf32>
    %44 = arith.addf %42, %43 : vector<1x8xf32>
    %cst_23 = arith.constant 0.000000e+00 : f32
    %45 = vector.broadcast %cst_23 : f32 to vector<1x8xf32>
    %46 = arith.maximumf %44, %45 : vector<1x8xf32>
    %c0_24 = arith.constant 0 : index
    %c0_25 = arith.constant 0 : index
    %47 = vector.load %arg8[%c0_24, %c0_25] : memref<8x16xf32, #tpu.memory_space<vmem>>, vector<8x16xf32>
    %cst_26 = arith.constant dense<0.000000e+00> : vector<1x16xf32>
    %48 = tpu.matmul %46, %47, %cst_26 {dimension_numbers = #tpu.dot_dimension_numbers<[1], [0], [0], [1], [0, 0, 1, 1], [], []>} : vector<1x8xf32>, vector<8x16xf32>, vector<1x16xf32> -> vector<1x16xf32>
    %c0_27 = arith.constant 0 : index
    %c0_28 = arith.constant 0 : index
    %49 = vector.load %arg9[%c0_27, %c0_28] : memref<1x16xf32, #tpu.memory_space<vmem>>, vector<1x16xf32>
    %50 = arith.addf %48, %49 : vector<1x16xf32>
    %51 = vector.shape_cast %50 : vector<1x16xf32> to vector<1x16x1xf32>
    %52 = vector.broadcast %51 : vector<1x16x1xf32> to vector<1x16x256xf32>
    %53 = arith.addf %0, %52 : vector<1x16x256xf32>
    %c0_29 = arith.constant 0 : index
    %c0_30 = arith.constant 0 : index
    %c0_31 = arith.constant 0 : index
    %54 = vector.load %arg10[%c0_29, %c0_30, %c0_31] : memref<1x16x256xf32, #tpu.memory_space<vmem>>, vector<1x16x256xf32>
    tpu.vector_store %arg10[%c0_29, %c0_30, %c0_31], %53 {strides = array<i32>} : memref<1x16x256xf32, #tpu.memory_space<vmem>>, vector<1x16x256xf32>,
    return
  }
  func.func @transform_0(%arg0: i32) -> (i32, i32, i32) {
    %c0_i32 = arith.constant 0 : i32
    %c0_i32_0 = arith.constant 0 : i32
    %c0_i32_1 = arith.constant 0 : i32
    return %arg0, %c0_i32, %c0_i32_0 : i32, i32, i32
  }
  func.func @transform_1(%arg0: i32) -> (i32, i32) {
    %c0_i32 = arith.constant 0 : i32
    %c0_i32_0 = arith.constant 0 : i32
    %c0_i32_1 = arith.constant 0 : i32
    return %c0_i32, %c0_i32_0 : i32, i32
  }
  func.func @transform_2(%arg0: i32) -> (i32, i32) {
    %c0_i32 = arith.constant 0 : i32
    %c0_i32_0 = arith.constant 0 : i32
    %c0_i32_1 = arith.constant 0 : i32
    return %c0_i32, %c0_i32_0 : i32, i32
  }
  func.func @transform_3(%arg0: i32) -> (i32, i32) {
    %c0_i32 = arith.constant 0 : i32
    %c0_i32_0 = arith.constant 0 : i32
    %c0_i32_1 = arith.constant 0 : i32
    return %c0_i32, %c0_i32_0 : i32, i32
  }
  func.func @transform_4(%arg0: i32) -> (i32, i32) {
    %c0_i32 = arith.constant 0 : i32
    %c0_i32_0 = arith.constant 0 : i32
    %c0_i32_1 = arith.constant 0 : i32
    return %c0_i32, %c0_i32_0 : i32, i32
  }
  func.func @transform_5(%arg0: i32) -> (i32, i32) {
    %c0_i32 = arith.constant 0 : i32
    %c0_i32_0 = arith.constant 0 : i32
    %c0_i32_1 = arith.constant 0 : i32
    return %c0_i32, %c0_i32_0 : i32, i32
  }
  func.func @transform_6(%arg0: i32) -> (i32, i32) {
    %c0_i32 = arith.constant 0 : i32
    %c0_i32_0 = arith.constant 0 : i32
    %c0_i32_1 = arith.constant 0 : i32
    return %c0_i32, %c0_i32_0 : i32, i32
  }
  func.func @transform_7(%arg0: i32) -> (i32, i32) {
    %c0_i32 = arith.constant 0 : i32
    %c0_i32_0 = arith.constant 0 : i32
    %c0_i32_1 = arith.constant 0 : i32
    return %c0_i32, %c0_i32_0 : i32, i32
  }
  func.func @transform_8(%arg0: i32) -> (i32, i32) {
    %c0_i32 = arith.constant 0 : i32
    %c0_i32_0 = arith.constant 0 : i32
    %c0_i32_1 = arith.constant 0 : i32
    return %c0_i32, %c0_i32_0 : i32, i32
  }
  func.func @transform_9(%arg0: i32) -> (i32, i32, i32) {
    %c0_i32 = arith.constant 0 : i32
    %c0_i32_0 = arith.constant 0 : i32
    %c0_i32_1 = arith.constant 0 : i32
    return %arg0, %c0_i32, %c0_i32_0 : i32, i32, i32
  }
}

</mosaic_0001>

<bundles_post_ra>
// kernel: context_block.1
= control target key start
LH: loop header
LB: loop body
LE: loop exit
PB: predicated region body
PF: predicated region fallthrough
CT: control target
= control target key end

     0   :  { %s709_s11 = smov 0   ;;  %s786_s0 = inlined_call_operand.vmem [shape: f32[2,16,256], index: 0, kind: input, shape index: {}]   ;;  %s787_s1 = inlined_call_operand.vmem [shape: f32[1,16], index: 1, kind: input, shape index: {}]   ;;  %s788_s2 = inlined_call_operand.<no memory space> [shape: f32[1,1], index: 2, kind: input, shape index: {}]   ;;  %s789_s3 = inlined_call_operand.vmem [shape: f32[16,8], index: 3, kind: input, shape index: {}]   ;;  %s790_s4 = inlined_call_operand.vmem [shape: f32[1,8], index: 4, kind: input, shape index: {}]   ;;  %s791_s5 = inlined_call_operand.vmem [shape: f32[1,8], index: 5, kind: input, shape index: {}]   ;;  %s792_s6 = inlined_call_operand.vmem [shape: f32[1,8], index: 6, kind: input, shape index: {}]   ;;  %s793_s7 = inlined_call_operand.vmem [shape: f32[8,16], index: 7, kind: input, shape index: {}]   ;;  %s794_s8 = inlined_call_operand.vmem [shape: f32[1,16], index: 8, kind: input, shape index: {}]   ;;  %s795_s9 = inlined_call_operand.vmem [shape: f32[2,16,256], index: 9, kind: output, shape index: {}]  }
   0x1   :  { %14 = sst [smem:[#allocation2]] %s788_s2 }
   0x2 LB: > { %s608_s12 = sadd.s32 4294967295, %s653_s11   ;;  %p612_p0 = scmp.ge.s32.totalorder %s653_s11, 1  ;;  %s653_s11 = sphi %s709_s11, %s20_s11  }
   0x3   : > { %p288_p1 = scmp.lt.s32.totalorder %s653_s11, 3 }
   0x5   : > { %p289_p2 = pnand %p612_p0, %p288_p1 }
   0x6   : > { %p324_p3 = scmp.lt.s32.totalorder (!%p289_p2), %s608_s12, 1  ;;  %s339_s18 = sld [smem:[#allocation2]] (!%p289_p2) }
   0x7   : > { %292 = sbr.rel (%p289_p2) target bundleno = 1179 (0x49b), region = 56 }
   0xc   : > { %s797_s12 = smov (!%p324_p3, %s608_s12), 1  ;;  %v338_v4 = vld [vmem:[%s787_s1] sm:$0x1]  ;;  %vm341_vm0 = vcmask 130048   ;;  %v340_v5 = vstv %s339_s18  ;;  %vm385_vm1 = vcmask 1040384   ;;  %v446_v23 = vld [vmem:[%s789_s3 + $0x8] sm:$0xff]  ;;  %v533_v49 = vlaneseq }
   0xd   : > { %s623_s2 = sshll.u32 %s797_s12, 5  ;;  %v445_v24 = vld [vmem:[%s789_s3] sm:$0xff]  ;;  %vm471_vm2 = vcmask 57344   ;;  %v655_v36 = vmov 8.0   ;;  %vm508_vm7 = vcmask 64512  }
   0xe   : > { %s328_s15 = scalar_lea.vmem %s786_s0, %s623_s2  ;;  %v447_v32 = vld [vmem:[%s790_s4] sm:$0x1]  ;;  %v534_v52 = vshrl.u32 %v533_v49, 7  ;;  %s333_s16 = scalar_lea.vmem %s795_s9, %s623_s2 }
   0xf   : > { %v725_v0 = vld [vmem:[%s328_s15 + $0x10] sm:$0xff]  ;;  %v727_v1 = vld [vmem:[%s328_s15 + $0x18] sm:$0xff]  ;;  %v729_v2 = vld [vmem:[%s328_s15] sm:$0xff] }
  0x10   : > { %359 = vmatpush.msra.mxu0 %v725_v0  ;;  %379 = vmatpush.msra.mxu1 %v727_v1  ;;  %v733_v3 = vld [vmem:[%s328_s15 + $0x8] sm:$0xff]  ;;  %v506_v48 = vld [vmem:[%s793_s7] sm:$0xff]  ;;  %v541_v54 = vadd.s32 8, %v534_v52 }
  0x11   : > { %419 = vmatpush.xpose.msra.mxu2 %v725_v0  ;;  %439 = vmatpush.xpose.msra.mxu3 %v727_v1  ;;  %v501_v62 = vld [vmem:[%s791_s5] sm:$0x1] }
  0x12   : > { %360 = vmatpush.msra.mxu0 %v729_v2  ;;  %380 = vmatpush.msra.mxu1 %v733_v3 }
  0x13   : > { %617 = vmatmul.msk.f32.vlgmr.msra.gmra.mxu0 %vm341_vm0, %v338_v4  ;;  %618 = vmatmul.msk.f32.vlgmr.msra.gmra.mxu1 %vm341_vm0, %v338_v4  ;;  %v503_v4 = vld [vmem:[%s792_s6] sm:$0x1] }
  0x14   : > { %465 = vmatpush.msrb.mxu0 %v446_v23  ;;  %527 = vmatpush.msrb.mxu1 %v506_v48 }
  0x15   : > { %420 = vmatpush.xpose.msra.mxu2 %v729_v2  ;;  %440 = vmatpush.xpose.msra.mxu3 %v733_v3 }
  0x16   : > { %466 = vmatpush.msrb.mxu0 %v445_v24  ;;  %634 = vset.pattern.permute.xlu2 %v534_v52 }
  0x17   : > { %636 = vset.pattern.permute.xlu0 %v541_v54 }
  0x90   : > { %v362_v6 = vpop.f32.mrf.mxu0  ;;  %v382_v7 = vpop.f32.mrf.mxu1 }
  0x91   : > { %v363_v8 = vadd.f32 %v362_v6, %v340_v5  ;;  %v383_v9 = vadd.f32 %v382_v7, %v340_v5 }
  0x93   : > { %v386_v10 = vsel %vm385_vm1, %v363_v8, -inf  ;;  %v387_v11 = vsel %vm385_vm1, %v383_v9, -inf }
  0x94   : > { %v388_v12 = vmax.f32 %v386_v10, %v387_v11 }
  0x96   : > { %389 = vmax.xlane.f32.xlu0 %v388_v12 }
 0x109   : > { %v390_v13 = vpop.xlane.xlu0 %389 }
 0x10a   : > { %v391_v14 = vsub.f32 %v363_v8, %v390_v13  ;;  %v392_v15 = vsub.f32 %v383_v9, %v390_v13  ;;  %v507_v8 = vld [vmem:[%s794_s8] sm:$0x1] }
 0x10c   : > { %v393_v16 = vmul.f32 1.442695, %v391_v14  ;;  %v395_v17 = vmul.f32 1.442695, %v392_v15 }
 0x10e   : > { %637 = vpow2.f32 %v393_v16 }
 0x10f   : > { %639 = vpow2.f32 %v395_v17 }
 0x114   : > { %v638_v18 = vpop.eup %637 }
 0x115   : > { %v640_v19 = vpop.eup %639  ;;  %v397_v20 = vsel %vm385_vm1, %v638_v18, 0.0 }
 0x116   : > { %v398_v21 = vsel %vm385_vm1, %v640_v19, 0.0 }
 0x117   : > { %v399_v22 = vadd.f32 %v398_v21, %v397_v20 }
 0x119   : > { %400 = vadd.xlane.f32.xlu0 %v399_v22 }
 0x18c   : > { %v401_v25 = vpop.xlane.xlu0 %400 }
 0x18d   : > { %641 = vrcp.f32 %v401_v25 }
 0x18e   : > { %643 = vrcp.f32 %v655_v36 }
 0x193   : > { %v642_v26 = vpop.eup %641 }
 0x194   : > { %v403_v27 = vmul.f32 %v642_v26, %v638_v18  ;;  %v404_v28 = vmul.f32 %v642_v26, %v640_v19  ;;  %v644_v37 = vpop.eup %643 }
 0x195   : > { %v476_v38 = vmul.f32 8.0, %v644_v37  ;;  %vm480_vm3 = vweird.f32 %v644_v37 }
 0x196   : > { %421 = vmatmul.f32.vlgmr.msra.gmra.mxu2 %v403_v27  ;;  %441 = vmatmul.f32.vlgmr.msra.gmra.mxu3 %v404_v28 }
 0x197   : > { %v477_v39 = vsub.f32 1.0, %v476_v38 }
 0x199   : > { %v478_v40 = vmul.f32 %v644_v37, %v477_v39 }
 0x19b   : > { %v479_v41 = vadd.f32 %v644_v37, %v478_v40 }
 0x19d   : > { %v481_v42 = vsel %vm480_vm3, %v644_v37, %v479_v41 }
 0x219   : > { %v422_v29 = vpop.f32.mrf.mxu2  ;;  %v442_v30 = vpop.f32.mrf.mxu3 }
 0x21a   : > { %v443_v31 = vadd.f32 %v442_v30, %v422_v29 }
 0x21c   : > { %619 = vmatmul.msk.f32.vlgmr.msrb.gmra.mxu0 %vm341_vm0, %v443_v31 }
 0x299   : > { %v468_v33 = vpop.f32.mrf.mxu0 }
 0x29a   : > { %v469_v34 = vadd.f32 %v468_v33, %v447_v32 }
 0x29c   : > { %v472_v35 = vsel %vm471_vm2, %v469_v34, 0.0 }
 0x29d   : > { %473 = vadd.xlane.f32.xlu1 %v472_v35 }
 0x310   : > { %v474_v43 = vpop.xlane.xlu1 %473 }
 0x311   : > { %v482_v44 = vmul.f32 %v481_v42, %v474_v43 }
 0x313   : > { %v483_v45 = vsub.f32 %v469_v34, %v482_v44 }
 0x315   : > { %v484_v46 = vmul.f32 %v483_v45, %v483_v45 }
 0x317   : > { %v485_v47 = vsel %vm471_vm2, %v484_v46, 0.0 }
 0x318   : > { %486 = vadd.xlane.f32.xlu1 %v485_v47 }
 0x38b   : > { %v487_v50 = vpop.xlane.xlu1 %486 }
 0x38c   : > { %v488_v51 = vmul.f32 %v487_v50, %v481_v42 }
 0x38e   : > { %v489_v53 = vadd.f32 1e-05, %v488_v51 }
 0x390   : > { %645 = vrsqrt.f32 %v489_v53  ;;  %vm496_vm5 = vweird.f32 %v489_v53 }
 0x396   : > { %v646_v55 = vpop.eup %645 }
 0x397   : > { %v491_v56 = vmul.f32 %v646_v55, %v489_v53  ;;  %vm497_vm4 = vweird.f32 %v646_v55 }
 0x398   : > { %vm498_vm6 = vmor %vm496_vm5, %vm497_vm4 }
 0x399   : > { %v492_v57 = vmul.f32 %v646_v55, %v491_v56 }
 0x39b   : > { %v493_v58 = vmul.f32 0.5, %v492_v57 }
 0x39d   : > { %v494_v59 = vsub.f32 1.5, %v493_v58 }
 0x39f   : > { %v495_v60 = vmul.f32 %v646_v55, %v494_v59 }
 0x3a1   : > { %v499_v61 = vsel %vm498_vm6, %v646_v55, %v495_v60 }
 0x3a2   : > { %v500_v63 = vmul.f32 %v499_v61, %v483_v45 }
 0x3a4   : > { %v502_v5 = vmul.f32 %v501_v62, %v500_v63 }
 0x3a6   : > { %v504_v6 = vadd.f32 %v503_v4, %v502_v5 }
 0x3a8   : > { %v505_v7 = vmax.f32 %v504_v6, 0.0 }
 0x3aa   : > { %620 = vmatmul.msk.f32.vlgmr.msrb.gmra.mxu1 %vm508_vm7, %v505_v7 }
 0x427   : > { %v529_v9 = vpop.f32.mrf.mxu1 }
 0x428   : > { %v530_v10 = vadd.f32 %v529_v9, %v507_v8 }
 0x42a   : > { %v532_v11 = vperm.slane %v530_v10, 0 }
 0x42c   : > { %537 = vperm.xlu2 %634, %v532_v11  }
 0x434   : > { %635 = vset.pattern.permute.xlu2 %v541_v54 }
 0x43c   : > { %543 = vperm.xlu2 %635, %v532_v11  }
 0x486   : > { %v538_v12 = vpop.permute.xlu2 %537 }
 0x487   : > { %v545_v13 = vadd.f32 %v538_v12, %v729_v2  ;;  %v546_v14 = vadd.f32 %v538_v12, %v733_v3 }
 0x489   : > { %549 = vst [vmem:[%s333_s16] sm:$0xff] %v545_v13 }
 0x48a   : > { %550 = vst [vmem:[%s333_s16 + $0x8] sm:$0xff] %v546_v14 }
 0x496   : > { %v544_v15 = vpop.permute.xlu2 %543 }
 0x497   : > { %v547_v16 = vadd.f32 %v544_v15, %v725_v0  ;;  %v548_v17 = vadd.f32 %v544_v15, %v727_v1 }
 0x499   : > { %551 = vst [vmem:[%s333_s16 + $0x10] sm:$0xff] %v547_v16 }
 0x49a   : > { %552 = vst [vmem:[%s333_s16 + $0x18] sm:$0xff] %v548_v17 }
 0x49b PF: > { %s20_s11 = sadd.s32 1, %s653_s11  }
 0x49c   : > { %p17_p4 = scmp.ge.s32.totalorder %s20_s11, 4  }
 0x49e   :  { %19 = sbr.rel (!%p17_p4) target bundleno = 2 (0x2), region = 86 }

</bundles_post_ra>
